<compile_context>
chip_gen: v6e
topology: v6e:2x2x1
jax: 0.10.0
libtpu: 0.0.40
codegen_flags: <defaults>
</compile_context>

<pallas_src>
import functools

import jax
import jax.numpy as jnp
from jax.experimental import pallas as pl
from jax.experimental.pallas import tpu as pltpu


def _round_up(x, m):
    return (x + m - 1) // m * m


# ----------------------------------------------------------------------------
# Pallas kernel 1: tiled matmul + bias + (optional) ReLU   (conv hot path)
# ----------------------------------------------------------------------------
def _matmul_bias_act_kernel(a_ref, b_ref, bias_ref, o_ref, acc_ref, *, act):
    k = pl.program_id(2)

    @pl.when(k == 0)
    def _():
        acc_ref[...] = jnp.zeros_like(acc_ref)

    acc_ref[...] += jnp.dot(a_ref[...], b_ref[...],
                            preferred_element_type=jnp.float32)

    @pl.when(k == pl.num_programs(2) - 1)
    def _():
        acc = acc_ref[...] + bias_ref[...].astype(jnp.float32)
        if act == "relu":
            acc = jnp.maximum(acc, 0.0)
        o_ref[...] = acc.astype(o_ref.dtype)


def matmul_bias_act(a, b, bias, act="none", out_dtype=jnp.bfloat16):
    """(M,K) @ (K,N) + bias, optional ReLU.  Inputs cast to bf16, f32 accum."""
    M, K = a.shape
    _, N = b.shape

    # Pad N (lanes) and K to multiples of 128 -> lane-dense, uniform tiles.
    N_pad = _round_up(N, 128)
    K_pad = _round_up(K, 128)
    if K_pad <= 1024:
        tk = K_pad                      # K is small for these convs: full-K tiles
    else:
        tk = 512
        K_pad = _round_up(K, tk)
    tm = min(256, _round_up(M, 8))
    tn = 128
    M_pad = _round_up(M, tm)

    a_p = jnp.pad(a.astype(jnp.bfloat16), ((0, M_pad - M), (0, K_pad - K)))
    b_p = jnp.pad(b.astype(jnp.bfloat16), ((0, K_pad - K), (0, N_pad - N)))
    bias_p = jnp.pad(bias.astype(jnp.float32), (0, N_pad - N)).reshape(1, N_pad)

    grid = (M_pad // tm, N_pad // tn, K_pad // tk)

    out = pl.pallas_call(
        functools.partial(_matmul_bias_act_kernel, act=act),
        out_shape=jax.ShapeDtypeStruct((M_pad, N_pad), out_dtype),
        grid=grid,
        in_specs=[
            pl.BlockSpec((tm, tk), lambda i, j, k: (i, k)),
            pl.BlockSpec((tk, tn), lambda i, j, k: (k, j)),
            pl.BlockSpec((1, tn), lambda i, j, k: (0, j)),
        ],
        out_specs=pl.BlockSpec((tm, tn), lambda i, j, k: (i, j)),
        scratch_shapes=[pltpu.VMEM((tm, tn), jnp.float32)],
        compiler_params=pltpu.CompilerParams(
            dimension_semantics=("parallel", "parallel", "arbitrary")),
        cost_estimate=pl.CostEstimate(
            flops=2 * M_pad * N_pad * K_pad,
            transcendentals=0,
            bytes_accessed=2 * (M_pad * K_pad + K_pad * N_pad + M_pad * N_pad)),
    )(a_p, b_p, bias_p)
    return out[:M, :N]


# ----------------------------------------------------------------------------
# Pallas kernel 2: bilinear upsample (align_corners=True) + argmax over classes
#                  tiled over output rows; W padded to lane-dense multiple of 128
# ----------------------------------------------------------------------------
def _upsample_argmax_kernel(logits_ref, rh_ref, rwt_ref, o_ref):
    # logits_ref: (1, C, Hs, Ws) bf16 (resident per image across row tiles)
    # rh_ref:     (th, Hs) f32 row-interp tile
    # rwt_ref:    (Ws, W_pad) f32 column-interp matrix
    # o_ref:      (1, th, W_pad) int32
    C = logits_ref.shape[1]
    rh = rh_ref[...]
    rwt = rwt_ref[...]
    best_val = None
    best_idx = None
    for c in range(C):  # C is small & static -> unrolled at trace time
        x = logits_ref[0, c, :, :].astype(jnp.float32)
        up = jnp.dot(
            jnp.dot(rh, x, preferred_element_type=jnp.float32),
            rwt,
            preferred_element_type=jnp.float32,
        )
        if c == 0:
            best_val = up
            best_idx = jnp.zeros(up.shape, jnp.int32)
        else:
            newer = up > best_val  # strict > keeps first occurrence (torch semantics)
            best_val = jnp.where(newer, up, best_val)
            best_idx = jnp.where(newer, jnp.int32(c), best_idx)
    o_ref[0, :, :] = best_idx


def upsample_argmax(logits_nchw, rh, rwt):
    N, C, Hs, Ws = logits_nchw.shape
    H, W = rh.shape[0], rwt.shape[1]

    th = min(128, _round_up(H, 8))          # output-row tile
    H_pad = _round_up(H, th)
    W_pad = _round_up(W, 128)               # lane-dense output stores
    rh_p = jnp.pad(rh, ((0, H_pad - H), (0, 0)))
    rwt_p = jnp.pad(rwt, ((0, 0), (0, W_pad - W)))

    out = pl.pallas_call(
        _upsample_argmax_kernel,
        out_shape=jax.ShapeDtypeStruct((N, H_pad, W_pad), jnp.int32),
        grid=(N, H_pad // th),
        in_specs=[
            pl.BlockSpec((1, C, Hs, Ws), lambda n, t: (n, 0, 0, 0)),
            pl.BlockSpec((th, Hs), lambda n, t: (t, 0)),
            pl.BlockSpec((Ws, W_pad), lambda n, t: (0, 0)),
        ],
        out_specs=pl.BlockSpec((1, th, W_pad), lambda n, t: (n, t, 0)),
        compiler_params=pltpu.CompilerParams(
            dimension_semantics=("parallel", "parallel")),
    )(logits_nchw, rh_p, rwt_p)
    return out[:, :H, :W]


# ----------------------------------------------------------------------------
# Glue: im2col patch extraction, conv wrapper, bilinear weight matrices
# ----------------------------------------------------------------------------
def _im2col(x_nhwc, kh, kw, stride, pad):
    N, H, W, C = x_nhwc.shape
    x = jnp.pad(x_nhwc, ((0, 0), (pad, pad), (pad, pad), (0, 0)))
    Ho = (H + 2 * pad - kh) // stride + 1
    Wo = (W + 2 * pad - kw) // stride + 1
    cols = []
    for i in range(kh):
        for j in range(kw):
            cols.append(x[:, i : i + stride * Ho : stride, j : j + stride * Wo : stride, :])
    cols = jnp.concatenate(cols, axis=-1)  # (N, Ho, Wo, kh*kw*C)
    return cols.reshape(N * Ho * Wo, kh * kw * C), Ho, Wo


def conv2d_bias_act(x_nhwc, w_oihw, b, stride, pad, act):
    """Conv (PyTorch weight layout OIHW) + bias + optional ReLU, via tiled Pallas matmul."""
    N = x_nhwc.shape[0]
    Cin = x_nhwc.shape[-1]
    Cout, _, kh, kw = w_oihw.shape
    cols, Ho, Wo = _im2col(x_nhwc, kh, kw, stride, pad)
    wmat = jnp.transpose(w_oihw, (2, 3, 1, 0)).reshape(kh * kw * Cin, Cout)
    out = matmul_bias_act(cols, wmat, b, act=act)      # bf16 activations between layers
    return out.reshape(N, Ho, Wo, Cout)


def bilinear_matrix(out_size, in_size):
    """Row-interpolation matrix for F.interpolate(mode='bilinear', align_corners=True)."""
    if in_size == 1:
        return jnp.ones((out_size, 1), jnp.float32)
    if out_size == 1:  # degenerate target: sample source index 0 (torch behavior)
        return jax.nn.one_hot(jnp.array([0]), in_size, dtype=jnp.float32)
    scale = (in_size - 1) / (out_size - 1)
    coords = jnp.arange(out_size, dtype=jnp.float32) * scale
    lo = jnp.clip(jnp.floor(coords).astype(jnp.int32), 0, in_size - 2)
    frac = coords - lo.astype(jnp.float32)
    lo_oh = jax.nn.one_hot(lo, in_size, dtype=jnp.float32)
    hi_oh = jax.nn.one_hot(lo + 1, in_size, dtype=jnp.float32)
    return lo_oh * (1.0 - frac)[:, None] + hi_oh * frac[:, None]


# ----------------------------------------------------------------------------
# STDC forward (mode='infer'):  backbone -> head -> upsample(out8) -> argmax(C)
# ----------------------------------------------------------------------------
def stdc_infer(imgs_nchw, params):
    N, C, H, W = imgs_nchw.shape
    x = jnp.transpose(imgs_nchw, (0, 2, 3, 1)).astype(jnp.bfloat16)  # NCHW -> NHWC, bf16

    # backbone: 5 strided ConvBNReLU stages, keep stages 3/4/5 (strides 8/16/32)
    feats = []
    for idx, (w, b) in enumerate(params["backbone"]):
        x = conv2d_bias_act(x, w, b, stride=2, pad=1, act="relu")
        if idx >= 2:
            feats.append(x)

    # infer mode returns torch.argmax(out8, dim=1); out16/out32 head branches are
    # dead code for the returned value, so only the stride-8 head is computed.
    w1, b1, w2, b2 = params["head"][0]
    h1 = conv2d_bias_act(feats[0], w1, b1, stride=1, pad=1, act="relu")
    logits8 = conv2d_bias_act(h1, w2, b2, stride=1, pad=0, act="none")
    # TODO(synk): the lane-sparse (num_classes) 1x1 classifier could be fused
    #             directly into the upsample/argmax kernel.

    out8 = jnp.transpose(logits8, (0, 3, 1, 2))  # (N, num_classes, Hs, Ws)
    Hs, Ws = out8.shape[2], out8.shape[3]
    rh = bilinear_matrix(H, Hs)
    rwt = bilinear_matrix(W, Ws).T
    return upsample_argmax(out8, rh, rwt)  # (N, H, W) int32 class map


# ----------------------------------------------------------------------------
def _init_conv(key, cout, cin, kh, kw, scale=0.1):
    kw_, kb_ = jax.random.split(key)
    w = jax.random.normal(kw_, (cout, cin, kh, kw), jnp.float32) * scale
    b = jax.random.normal(kb_, (cout,), jnp.float32) * scale
    return w, b


if __name__ == "__main__":
    key = jax.random.PRNGKey(0)

    # dictionary defines the classes (like the torch module's self.dictionary)
    dictionary = [{"background": 1.0}, {"road": 1.0}, {"car": 1.0}, {"person": 1.0}]
    num_classes = len(dictionary)

    backbone_chans = [8, 16, 32, 64, 128]  # stages 1..5
    head_mid = 16

    keys = list(jax.random.split(key, 16))
    ki = iter(keys)

    backbone_params = []
    cin = 3
    for cout in backbone_chans:
        backbone_params.append(_init_conv(next(ki), cout, cin, 3, 3))
        cin = cout

    head_params = []
    for c_feat in backbone_chans[2:]:  # stages 3,4,5
        w1, b1 = _init_conv(next(ki), head_mid, c_feat, 3, 3)
        w2, b2 = _init_conv(next(ki), num_classes, head_mid, 1, 1)
        head_params.append((w1, b1, w2, b2))

    params = {"backbone": backbone_params, "head": head_params}

    imgs = jax.random.normal(next(ki), (2, 3, 32, 32), jnp.float32)  # NCHW

    out = stdc_infer(imgs, params)
    out = jax.block_until_ready(out)
    assert out.shape == (2, 32, 32) and out.dtype == jnp.int32
    print("KERNEL_OK")
</pallas_src>

<mosaic_0001>
module attributes {stable_mosaic.version = 11 : i64} {
  func.func @_matmul_bias_act_kernel(%arg0: i32, %arg1: i32, %arg2: i32, %arg3: memref<256x128xbf16, #tpu.memory_space<vmem>>, %arg4: memref<128x128xbf16, #tpu.memory_space<vmem>>, %arg5: memref<1x128xf32, #tpu.memory_space<vmem>>, %arg6: memref<256x128xbf16, #tpu.memory_space<vmem>>, %arg7: memref<256x128xf32, #tpu.memory_space<vmem>>) attributes {dimension_semantics = [#tpu.dimension_semantics<parallel>, #tpu.dimension_semantics<parallel>, #tpu.dimension_semantics<arbitrary>], iteration_bounds = array<i64: 2, 1, 1>, scalar_prefetch = 0 : i64, scratch_operands = 1 : i64, tpu.core_type = #tpu.core_type<tc>, window_params = [{transform_indices = @transform_0, window_bounds = array<i64: 256, 128>}, {transform_indices = @transform_1, window_bounds = array<i64: 128, 128>}, {transform_indices = @transform_2, window_bounds = array<i64: 1, 128>}, {transform_indices = @transform_3, window_bounds = array<i64: 256, 128>}]} {
    %c0_i32 = arith.constant 0 : i32
    %0 = arith.cmpi eq, %arg2, %c0_i32 : i32
    %1 = arith.extui %0 : i1 to i32
    %c0_i32_0 = arith.constant 0 : i32
    %2 = arith.cmpi ne, %1, %c0_i32_0 : i32
    scf.if %2 {
      %cst_10 = arith.constant 0.000000e+00 : f32
      %12 = vector.broadcast %cst_10 : f32 to vector<256x128xf32>
      %c0_11 = arith.constant 0 : index
      %c0_12 = arith.constant 0 : index
      %13 = vector.load %arg7[%c0_11, %c0_12] : memref<256x128xf32, #tpu.memory_space<vmem>>, vector<256x128xf32>
      tpu.vector_store %arg7[%c0_11, %c0_12], %12 {strides = array<i32>} : memref<256x128xf32, #tpu.memory_space<vmem>>, vector<256x128xf32>,
    } else {
    }
    %c0 = arith.constant 0 : index
    %c0_1 = arith.constant 0 : index
    %3 = vector.load %arg7[%c0, %c0_1] : memref<256x128xf32, #tpu.memory_space<vmem>>, vector<256x128xf32>
    %c0_2 = arith.constant 0 : index
    %c0_3 = arith.constant 0 : index
    %4 = vector.load %arg3[%c0_2, %c0_3] : memref<256x128xbf16, #tpu.memory_space<vmem>>, vector<256x128xbf16>
    %c0_4 = arith.constant 0 : index
    %c0_5 = arith.constant 0 : index
    %5 = vector.load %arg4[%c0_4, %c0_5] : memref<128x128xbf16, #tpu.memory_space<vmem>>, vector<128x128xbf16>
    %cst = arith.constant dense<0.000000e+00> : vector<256x128xf32>
    %6 = tpu.matmul %4, %5, %cst {dimension_numbers = #tpu.dot_dimension_numbers<[1], [0], [0], [1], [0, 0, 1, 1], [], []>} : vector<256x128xbf16>, vector<128x128xbf16>, vector<256x128xf32> -> vector<256x128xf32>
    %7 = arith.addf %3, %6 : vector<256x128xf32>
    %c0_6 = arith.constant 0 : index
    %c0_7 = arith.constant 0 : index
    %8 = vector.load %arg7[%c0_6, %c0_7] : memref<256x128xf32, #tpu.memory_space<vmem>>, vector<256x128xf32>
    tpu.vector_store %arg7[%c0_6, %c0_7], %7 {strides = array<i32>} : memref<256x128xf32, #tpu.memory_space<vmem>>, vector<256x128xf32>,
    %c0_i32_8 = arith.constant 0 : i32
    %9 = arith.cmpi eq, %arg2, %c0_i32_8 : i32
    %10 = arith.extui %9 : i1 to i32
    %c0_i32_9 = arith.constant 0 : i32
    %11 = arith.cmpi ne, %10, %c0_i32_9 : i32
    scf.if %11 {
      %c0_10 = arith.constant 0 : index
      %c0_11 = arith.constant 0 : index
      %12 = vector.load %arg7[%c0_10, %c0_11] : memref<256x128xf32, #tpu.memory_space<vmem>>, vector<256x128xf32>
      %c0_12 = arith.constant 0 : index
      %c0_13 = arith.constant 0 : index
      %13 = vector.load %arg5[%c0_12, %c0_13] : memref<1x128xf32, #tpu.memory_space<vmem>>, vector<1x128xf32>
      %14 = vector.broadcast %13 : vector<1x128xf32> to vector<256x128xf32>
      %15 = arith.addf %12, %14 : vector<256x128xf32>
      %cst_14 = arith.constant 0.000000e+00 : f32
      %16 = vector.broadcast %cst_14 : f32 to vector<256x128xf32>
      %17 = arith.maximumf %15, %16 : vector<256x128xf32>
      %18 = arith.truncf %17 : vector<256x128xf32> to vector<256x128xbf16>
      %c0_15 = arith.constant 0 : index
      %c0_16 = arith.constant 0 : index
      %19 = vector.load %arg6[%c0_15, %c0_16] : memref<256x128xbf16, #tpu.memory_space<vmem>>, vector<256x128xbf16>
      tpu.vector_store %arg6[%c0_15, %c0_16], %18 {strides = array<i32>} : memref<256x128xbf16, #tpu.memory_space<vmem>>, vector<256x128xbf16>,
    } else {
    }
    return
  }
  func.func @transform_0(%arg0: i32, %arg1: i32, %arg2: i32) -> (i32, i32) {
    %c0_i32 = arith.constant 0 : i32
    return %arg0, %arg2 : i32, i32
  }
  func.func @transform_1(%arg0: i32, %arg1: i32, %arg2: i32) -> (i32, i32) {
    %c0_i32 = arith.constant 0 : i32
    return %arg2, %arg1 : i32, i32
  }
  func.func @transform_2(%arg0: i32, %arg1: i32, %arg2: i32) -> (i32, i32) {
    %c0_i32 = arith.constant 0 : i32
    %c0_i32_0 = arith.constant 0 : i32
    return %c0_i32, %arg1 : i32, i32
  }
  func.func @transform_3(%arg0: i32, %arg1: i32, %arg2: i32) -> (i32, i32) {
    %c0_i32 = arith.constant 0 : i32
    return %arg0, %arg1 : i32, i32
  }
}

</mosaic_0001>

<bundles_post_ra>
// kernel: tpu_custom_call.1
= control target key start
LH: loop header
LB: loop body
LE: loop exit
PB: predicated region body
PF: predicated region fallthrough
CT: control target
= control target key end

     0   :  { %8 = vsyncpa [#allocation4], 0  ;;  %s1962_s0 = inlined_call_operand.hbm [shape: bf16[512,128], index: 0, kind: input, shape index: {}]   ;;  %s1963_s1 = inlined_call_operand.hbm [shape: bf16[128,128], index: 1, kind: input, shape index: {}]   ;;  %s1964_s2 = inlined_call_operand.vmem [shape: f32[1,128], index: 2, kind: input, shape index: {}]   ;;  %s1965_s3 = inlined_call_operand.hbm [shape: bf16[512,128], index: 3, kind: output, shape index: {}]  }
   0x1   :  { %10 = vsyncpa [#allocation4 + $0x1], 0 }
   0x2   :  { %11 = vsyncpa [#allocation7], 0 }
   0x3   :  { %12 = vsyncpa [#allocation5], 0 }
   0x4   :  { %14 = vsyncpa [#allocation5 + $0x1], 0  ;;  %s1697_s12 = smov 0   ;;  %s1699_s13 = smov 0  }
   0x5   :  { %s1701_s14 = smov 0   ;;  %s1703_s15 = smov 0  }
   0x6   :  { %s1705_s16 = smov 0   ;;  %s1707_s17 = smov 0  }
   0x7 LB: > { %s1137_s18 = sadd.s32 4294967295, %s1668_s17   ;;  %s1138_s19 = sadd.s32 4294967294, %s1668_s17   ;;  %s1668_s17 = sphi %s1707_s17, %s20_s17   ;;  %s1664_s16 = sphi %s1705_s16, %s1987_s16   ;;  %s1660_s15 = sphi %s1703_s15, %s1986_s15   ;;  %s1656_s14 = sphi %s1701_s14, %s1985_s14   ;;  %s1652_s13 = sphi %s1699_s13, %s1984_s13   ;;  %s1648_s12 = sphi %s1697_s12, %s1983_s12  }
   0x8   : > { %p61_p0 = scmp.ne.s32.totalorder %s1652_s13, %s1648_s12  ;;  %p1731_p1 = scmp.eq.s32.totalorder %s1137_s18, 0 }
   0x9   : > { %p1735_p2 = scmp.eq.s32.totalorder %s1137_s18, 1  ;;  %p147_p3 = scmp.eq.s32.totalorder %s1138_s19, 1 }
   0xa   : > { %p1741_p4 = por %p1731_p1, %p61_p0  ;;  %p1139_p5 = scmp.ge.s32.totalorder %s1668_s17, 1 }
   0xb   : > { %p1746_p6 = por %p147_p3, %p61_p0  ;;  %p154_p7 = scmp.lt.s32.totalorder %s1668_s17, 3 }
   0xc   : > { %s1971_s22 = scalar_select %p1741_p4, 1, 0 }
   0xd   : > { %s1972_s23 = scalar_select %p1746_p6, 1, 0 }
   0xe   : > { %p1751_p8 = pnand %p1139_p5, %p154_p7  ;;  %s1670_s25 = smov [#allocation6]  }
   0xf   : > { %s170_s26 = sshll.u32 %s1670_s25, 4  ;;  %s39_s28 = sadd.s32 1, %s1664_s16  ;;  %s171_s26 = int_to_ptr.vmem [resolvable:$true] %s170_s26 }
  0x10   : > { %p1437_p9 = pneg %p1751_p8  ;;  %s1541_s29 = scalar_lea.vmem %s171_s26, 1024 }
  0x11   : > { %p1542_p13 = scmp.ne.s32.totalorder %s171_s26, %s1541_s29  ;;  %p1549_p5 = scmp.lt.s32.totalorder %s171_s26, %s171_s26 }
  0x12   : > { %p1760_p11 = pnand %p1437_p9, %p1731_p1  ;;  %p1550_p7 = scmp.lt.s32.totalorder %s1541_s29, %s1541_s29 }
  0x14   : > { %p1532_p12 = pneg %p1760_p11  ;;  %p1551_p6 = por %p1550_p7, %p1549_p5 }
  0x16   : > { %p1544_p0 = pnand %p1542_p13, %p1532_p12 }
  0x18   : > { %p1545_p3 = pneg %p1544_p0 }
  0x1a   : > { %p1552_p4 = pnand %p1551_p6, %p1545_p3 }
  0x1c   : > { %1555 = shalt.err (!%p1552_p4)
}
  0x1d   : > { %s1967_s30 = smov 64   ;;  %s1968_s4 = smov 4  }
  0x1e   : > { %1440 = dma.hbm_to_vmem [thread:$0]  (!%p1760_p11), %s1963_s1, 1024, %s171_s26, [#allocation7], %s1967_s30, %s1967_s30, %s1968_s4  }
  0x1f   : > { %p41_p4 = scmp.ge.s32.totalorder %s39_s28, 2  ;;  %s48_s7 = sadd.s32 1, %s1656_s14 }
  0x20   : > { %p55_p6 = scmp.ne.s32.totalorder %s1656_s14, %s1652_s13  ;;  %p56_p9 = scmp.eq.s32.totalorder %s1668_s17, 0 }
  0x21   : > { %s1989_s28 = smov (%p41_p4, %s39_s28), 0  ;;  %p1450_p0 = scmp.lt.s32.totalorder %s1668_s17, 2 }
  0x22   : > { %p1781_p12 = por %p56_p9, %p55_p6  ;;  %p1787_p13 = por %p1735_p2, %p55_p6 }
  0x23   : > { %s43_s10 = ssub.s32 %s1664_s16, %s1989_s28  ;;  %s190_s11 = sand.u32 1, %s1656_s14  }
  0x24   : > { %p46_p11 = scmp.eq.s32.totalorder %s43_s10, 0  ;;  %s1143_s18 = sshll.u32 %s190_s11, 7 }
  0x25   : > { %s1212_s25 = sshll.u32 %s1664_s16, 11  ;;  %s194_s5 = scalar_lea.vmem [#allocation3], %s1143_s18 }
  0x26   : > { %s1796_s19 = scalar_select %p46_p11, %s1656_s14, %s48_s7  }
  0x27   : > { %s201_s29 = scalar_lea.hbm %s1962_s0, %s1212_s25  ;;  %s202_s6 = sshll.u32 %s194_s5, 4  ;;  %s203_s6 = int_to_ptr.vmem [resolvable:$true] %s202_s6 }
  0x28   : > { %p1804_p2 = pnand %p1450_p0, %p1781_p12  ;;  %s191_s30 = scalar_lea.sflag [#allocation4], %s190_s11 }
  0x29   : > { %s1569_s10 = scalar_lea.vmem %s203_s6, 2048  ;;  %s1673_s7 = smov [#allocation3]  }
  0x2a   : > { %p1558_p3 = pneg %p1804_p2  ;;  %p1570_p5 = scmp.ne.s32.totalorder %s203_s6, %s1569_s10 }
  0x2b   : > { %s1574_s4 = sshll.u32 %s1673_s7, 4  ;;  %s1575_s4 = int_to_ptr.vmem [resolvable:$false] %s1574_s4 }
  0x2c   : > { %p1572_p7 = pnand %p1570_p5, %p1558_p3  ;;  %s1576_s25 = scalar_lea.vmem %s1575_s4, 4096 }
  0x2d   : > { %p1577_p6 = scmp.lt.s32.totalorder %s203_s6, %s1575_s4  ;;  %p1578_p9 = scmp.lt.s32.totalorder %s1576_s25, %s1569_s10 }
  0x2e   : > { %p1573_p4 = pneg %p1572_p7 }
  0x2f   : > { %p1579_p11 = por %p1578_p9, %p1577_p6 }
  0x31   : > { %p1580_p10 = pnand %p1579_p11, %p1573_p4 }
  0x33   : > { %1583 = shalt.err (!%p1580_p10)
}
  0x34   : > { %s1978_s8 = smov 4   ;;  %s1979_s18 = smov 64  }
  0x35   : > { %1444 = dma.hbm_to_vmem [thread:$0]  (!%p1804_p2), %s201_s29, 2048, %s203_s6, %s191_s30, %s1979_s18, %s1979_s18, %s1978_s8  }
  0x36   : > { %214 = sbr.rel (%p1751_p8) target bundleno = 338 (0x152), region = 32  ;;  %s1818_s11 = sand.u32 (!%p1751_p8), 1, %s1652_s13  }
  0x37   : > { %s1147_s4 = sshll.u32 (!%p1751_p8), %s1818_s11, 7  ;;  %s217_s26 = scalar_lea.sflag (!%p1751_p8), [#allocation4], %s1818_s11 }
  0x38   : > { %s1824_s27 = scalar_lea.vmem (!%p1751_p8), [#allocation3], %s1147_s4  ;;  %p1980_p10 = scmp.ne.s32.totalorder (!%p1751_p8), %s1971_s22, 0 }
  0x3b   : > { %1635 = dma.done.wait (%p1980_p10), %s217_s26, 2048  }
  0x3c   : > { %1637 = vsyncadd (%p1980_p10), %s217_s26, 4294965248 }
  0x3d   : > { %1639 = dma.done.wait (%p1731_p1), [#allocation7], 1024  }
  0x3e   : > { %1641 = vsyncadd (%p1731_p1), [#allocation7], 4294966272  ;;  %v1506_v0 = vld [vmem:[#allocation6 + $0x38] sm:$0xff]   ;;  %v1507_v1 = vld [vmem:[#allocation6 + $0x30] sm:$0xff]   ;;  %s1867_s24 = scalar_lea.vmem [#allocation8], %s1147_s4  ;;  %s1245_s30 = sshll.u32 %s1660_s15, 11 }
  0x3f   : > { %1365 = vmatprep.subr.bf16.mxu0 %v1506_v0  ;;  %1413 = vmatprep.subr.bf16.mxu1 %v1506_v0  ;;  %v1508_v2 = vld [vmem:[#allocation6 + $0x28] sm:$0xff]   ;;  %v1509_v3 = vld [vmem:[#allocation6 + $0x20] sm:$0xff]   ;;  %v1510_v6 = vld [vmem:[#allocation6 + $0x18] sm:$0xff]   ;;  %s1023_s29 = sshll.u32 %s1867_s24, 4  ;;  %s1908_s21 = scalar_lea.hbm %s1965_s3, %s1245_s30  ;;  %s1910_s29 = int_to_ptr.vmem [resolvable:$true] %s1023_s29 }
  0x40   : > { %1366 = vmatpush3.bf16.msra.mxu0 %v1506_v0  ;;  %1421 = vmatpush3.bf16.msra.mxu1 %v1506_v0  ;;  %v1514_v4 = vld [vmem:[%s1824_s27] sm:$0xff]   ;;  %v1511_v7 = vld [vmem:[#allocation6 + $0x10] sm:$0xff]   ;;  %v1512_v8 = vld [vmem:[#allocation6 + $0x8] sm:$0xff]   ;;  %s1009_s15 = scalar_lea.sflag [#allocation5], %s1818_s11  ;;  %s1584_s10 = scalar_lea.vmem %s1910_s29, 2048 }
  0x41   : > { %1367 = vmatprep.subr.bf16.mxu0 %v1507_v1  ;;  %1414 = vmatprep.subr.bf16.mxu1 %v1507_v1  ;;  %v1515_v5 = vld [vmem:[%s1824_s27 + $0x40] sm:$0xff]   ;;  %v1516_v10 = vld [vmem:[%s1824_s27 + $0x8] sm:$0xff]   ;;  %v1518_v12 = vld [vmem:[%s1824_s27 + $0x10] sm:$0xff]   ;;  %p1585_p1 = scmp.ne.s32.totalorder %s1910_s29, %s1584_s10  ;;  %s1674_s7 = smov [#allocation8]  }
  0x42   : > { %1381 = vmatprep.mubr.bf16.mxu0 %v1514_v4  ;;  %1397 = vmatprep.mubr.bf16.mxu1 %v1515_v5  ;;  %v1513_v9 = vld [vmem:[#allocation6] sm:$0xff]   ;;  %v1517_v11 = vld [vmem:[%s1824_s27 + $0x48] sm:$0xff]   ;;  %v1519_v13 = vld [vmem:[%s1824_s27 + $0x50] sm:$0xff]   ;;  %s1588_s25 = sshll.u32 %s1674_s7, 4  ;;  %s1589_s25 = int_to_ptr.vmem [resolvable:$false] %s1588_s25 }
  0x43   : > { %v1520_v14 = vld [vmem:[%s1824_s27 + $0x18] sm:$0xff]   ;;  %v1522_v16 = vld [vmem:[%s1824_s27 + $0x20] sm:$0xff]   ;;  %v1524_v18 = vld [vmem:[%s1824_s27 + $0x28] sm:$0xff]   ;;  %p1586_p8 = pnand %p1585_p1, %p1787_p13  ;;  %s1590_s8 = scalar_lea.vmem %s1589_s25, 4096 }
  0x44   : > { %1368 = vmatpush3.bf16.msra.mxu0 %v1507_v1  ;;  %1422 = vmatpush3.bf16.msra.mxu1 %v1507_v1  ;;  %v1521_v15 = vld [vmem:[%s1824_s27 + $0x58] sm:$0xff]   ;;  %v1523_v17 = vld [vmem:[%s1824_s27 + $0x60] sm:$0xff]   ;;  %v1525_v19 = vld [vmem:[%s1824_s27 + $0x68] sm:$0xff]   ;;  %p1591_p0 = scmp.lt.s32.totalorder %s1910_s29, %s1589_s25  ;;  %p1592_p2 = scmp.lt.s32.totalorder %s1590_s8, %s1584_s10 }
  0x45   : > { %1369 = vmatprep.subr.bf16.mxu0 %v1508_v2  ;;  %1415 = vmatprep.subr.bf16.mxu1 %v1508_v2  ;;  %v1526_v20 = vld [vmem:[%s1824_s27 + $0x30] sm:$0xff]   ;;  %v1528_v22 = vld [vmem:[%s1824_s27 + $0x38] sm:$0xff]   ;;  %v1853_v24 = vld [vmem:[%s1964_s2] ss:$0 sm:$0xff]  ;;  %p1587_p12 = pneg %p1586_p8 }
  0x46   : > { %v1527_v21 = vld [vmem:[%s1824_s27 + $0x70] sm:$0xff]   ;;  %v1529_v23 = vld [vmem:[%s1824_s27 + $0x78] sm:$0xff]   ;;  %p1593_p3 = por %p1592_p2, %p1591_p0 }
  0x48   : > { %1370 = vmatpush3.bf16.msra.mxu0 %v1508_v2  ;;  %1423 = vmatpush3.bf16.msra.mxu1 %v1508_v2  ;;  %p1594_p5 = pnand %p1593_p3, %p1587_p12 }
  0x49   : > { %1371 = vmatprep.subr.bf16.mxu0 %v1509_v3  ;;  %1416 = vmatprep.subr.bf16.mxu1 %v1509_v3 }
  0x4c   : > { %1372 = vmatpush3.bf16.msra.mxu0 %v1509_v3  ;;  %1424 = vmatpush3.bf16.msra.mxu1 %v1509_v3 }
  0x4d   : > { %1373 = vmatprep.subr.bf16.mxu0 %v1510_v6  ;;  %1417 = vmatprep.subr.bf16.mxu1 %v1510_v6 }
  0x50   : > { %1374 = vmatpush3.bf16.msra.mxu0 %v1510_v6  ;;  %1425 = vmatpush3.bf16.msra.mxu1 %v1510_v6 }
  0x51   : > { %1375 = vmatprep.subr.bf16.mxu0 %v1511_v7  ;;  %1418 = vmatprep.subr.bf16.mxu1 %v1511_v7 }
  0x54   : > { %1376 = vmatpush3.bf16.msra.mxu0 %v1511_v7  ;;  %1426 = vmatpush3.bf16.msra.mxu1 %v1511_v7 }
  0x55   : > { %1377 = vmatprep.subr.bf16.mxu0 %v1512_v8  ;;  %1419 = vmatprep.subr.bf16.mxu1 %v1512_v8 }
  0x58   : > { %1378 = vmatpush3.bf16.msra.mxu0 %v1512_v8  ;;  %1427 = vmatpush3.bf16.msra.mxu1 %v1512_v8 }
  0x59   : > { %1379 = vmatprep.subr.bf16.mxu0 %v1513_v9  ;;  %1420 = vmatprep.subr.bf16.mxu1 %v1513_v9 }
  0x5c   : > { %1380 = vmatpush3.bf16.msra.mxu0 %v1513_v9  ;;  %1428 = vmatpush3.bf16.msra.mxu1 %v1513_v9 }
  0x5f   : > { %1382 = vmatmul.mubr.bf16.vlgmr.msra.gmra.mxu0 %v1516_v10  ;;  %1398 = vmatmul.mubr.bf16.vlgmr.msra.gmra.mxu1 %v1517_v11 }
  0x60   : > { %1385 = vmatprep.mubr.bf16.mxu0 %v1518_v12  ;;  %1401 = vmatprep.mubr.bf16.mxu1 %v1519_v13 }
  0x67   : > { %1386 = vmatmul.mubr.bf16.gmra.mxu0 %v1520_v14  ;;  %1402 = vmatmul.mubr.bf16.gmra.mxu1 %v1521_v15 }
  0x68   : > { %1389 = vmatprep.mubr.bf16.mxu0 %v1522_v16  ;;  %1405 = vmatprep.mubr.bf16.mxu1 %v1523_v17 }
  0x6f   : > { %1390 = vmatmul.mubr.bf16.gmra.mxu0 %v1524_v18  ;;  %1406 = vmatmul.mubr.bf16.gmra.mxu1 %v1525_v19 }
  0x70   : > { %1393 = vmatprep.mubr.bf16.mxu0 %v1526_v20  ;;  %1409 = vmatprep.mubr.bf16.mxu1 %v1527_v21 }
  0x77   : > { %1394 = vmatmul.mubr.bf16.gmra.mxu0 %v1528_v22  ;;  %1410 = vmatmul.mubr.bf16.gmra.mxu1 %v1529_v23 }
 0x11f   : > { %v1383_v25 = vpop.f32.mrf.mxu0  ;;  %v1399_v26 = vpop.f32.mrf.mxu1 }
 0x120   : > { %v786_v27 = vadd.f32 %v1383_v25, %v1853_v24  ;;  %v802_v28 = vadd.f32 %v1399_v26, %v1853_v24 }
 0x121   : > { %v551_v29 = vpop.f32.mrf.mxu0  ;;  %v615_v30 = vpop.f32.mrf.mxu1 }
 0x122   : > { %v784_v31 = vadd.f32 %v1853_v24, %v551_v29  ;;  %v800_v32 = vadd.f32 %v1853_v24, %v615_v30  ;;  %v818_v37 = vmax.f32 %v786_v27, 0.0  ;;  %v834_v38 = vmax.f32 %v802_v28, 0.0 }
 0x123   : > { %v1384_v33 = vpop.f32.mrf.mxu0  ;;  %v1400_v34 = vpop.f32.mrf.mxu1 }
 0x124   : > { %v787_v35 = vadd.f32 %v1384_v33, %v1853_v24  ;;  %v803_v36 = vadd.f32 %v1400_v34, %v1853_v24  ;;  %v816_v45 = vmax.f32 %v784_v31, 0.0  ;;  %v832_v46 = vmax.f32 %v800_v32, 0.0 }
 0x125   : > { %v554_v39 = vpop.f32.mrf.mxu0  ;;  %v618_v40 = vpop.f32.mrf.mxu1 }
 0x126   : > { %v819_v41 = vmax.f32 %v787_v35, 0.0  ;;  %v835_v42 = vmax.f32 %v803_v36, 0.0  ;;  %v785_v43 = vadd.f32 %v1853_v24, %v554_v39  ;;  %v801_v44 = vadd.f32 %v1853_v24, %v618_v40 }
 0x127   : > { %v1387_v47 = vpop.f32.mrf.mxu0  ;;  %v1403_v48 = vpop.f32.mrf.mxu1 }
 0x128   : > { %v1254_v49 = vpack.c.bf16 %v819_v41, %v818_v37  ;;  %v1294_v50 = vpack.c.bf16 %v835_v42, %v834_v38  ;;  %v817_v51 = vmax.f32 %v785_v43, 0.0  ;;  %v833_v52 = vmax.f32 %v801_v44, 0.0 }
 0x129   : > { %v790_v53 = vadd.f32 %v1387_v47, %v1853_v24  ;;  %v806_v54 = vadd.f32 %v1403_v48, %v1853_v24  ;;  %v567_v55 = vpop.f32.mrf.mxu0  ;;  %v631_v56 = vpop.f32.mrf.mxu1 }
 0x12a   : > { %1326 = vst [vmem:[%s1867_s24 + $0x8] sm:$0xff] %v1254_v49   ;;  %1334 = vst [vmem:[%s1867_s24 + $0x48] sm:$0xff] %v1294_v50   ;;  %v1249_v57 = vpack.c.bf16 %v817_v51, %v816_v45  ;;  %v1289_v58 = vpack.c.bf16 %v833_v52, %v832_v46  ;;  %v788_v59 = vadd.f32 %v1853_v24, %v567_v55 }
 0x12b   : > { %v804_v60 = vadd.f32 %v1853_v24, %v631_v56  ;;  %v1388_v61 = vpop.f32.mrf.mxu0  ;;  %v1404_v62 = vpop.f32.mrf.mxu1  ;;  %v822_v1 = vmax.f32 %v790_v53, 0.0  ;;  %v838_v2 = vmax.f32 %v806_v54, 0.0 }
 0x12c   : > { %1250 = vst [vmem:[%s1867_s24] sm:$0xff] %v1249_v57   ;;  %1333 = vst [vmem:[%s1867_s24 + $0x40] sm:$0xff] %v1289_v58   ;;  %v791_v63 = vadd.f32 %v1388_v61, %v1853_v24  ;;  %v807_v0 = vadd.f32 %v1404_v62, %v1853_v24  ;;  %v820_v9 = vmax.f32 %v788_v59, 0.0 }
 0x12d   : > { %v570_v3 = vpop.f32.mrf.mxu0  ;;  %v634_v4 = vpop.f32.mrf.mxu1  ;;  %v836_v10 = vmax.f32 %v804_v60, 0.0 }
 0x12e   : > { %v823_v5 = vmax.f32 %v791_v63, 0.0  ;;  %v839_v6 = vmax.f32 %v807_v0, 0.0  ;;  %v789_v7 = vadd.f32 %v1853_v24, %v570_v3  ;;  %v805_v8 = vadd.f32 %v1853_v24, %v634_v4 }
 0x12f   : > { %v1391_v11 = vpop.f32.mrf.mxu0  ;;  %v1407_v12 = vpop.f32.mrf.mxu1 }
 0x130   : > { %v1264_v13 = vpack.c.bf16 %v823_v5, %v822_v1  ;;  %v1304_v14 = vpack.c.bf16 %v839_v6, %v838_v2  ;;  %v821_v15 = vmax.f32 %v789_v7, 0.0  ;;  %v837_v16 = vmax.f32 %v805_v8, 0.0 }
 0x131   : > { %v794_v17 = vadd.f32 %v1391_v11, %v1853_v24  ;;  %v810_v18 = vadd.f32 %v1407_v12, %v1853_v24  ;;  %v583_v19 = vpop.f32.mrf.mxu0  ;;  %v647_v20 = vpop.f32.mrf.mxu1 }
 0x132   : > { %1328 = vst [vmem:[%s1867_s24 + $0x18] sm:$0xff] %v1264_v13   ;;  %1336 = vst [vmem:[%s1867_s24 + $0x58] sm:$0xff] %v1304_v14   ;;  %v1259_v21 = vpack.c.bf16 %v821_v15, %v820_v9  ;;  %v1299_v22 = vpack.c.bf16 %v837_v16, %v836_v10  ;;  %v792_v23 = vadd.f32 %v1853_v24, %v583_v19 }
 0x133   : > { %v808_v25 = vadd.f32 %v1853_v24, %v647_v20  ;;  %v1392_v26 = vpop.f32.mrf.mxu0  ;;  %v1408_v27 = vpop.f32.mrf.mxu1  ;;  %v826_v30 = vmax.f32 %v794_v17, 0.0  ;;  %v842_v31 = vmax.f32 %v810_v18, 0.0 }
 0x134   : > { %1327 = vst [vmem:[%s1867_s24 + $0x10] sm:$0xff] %v1259_v21   ;;  %1335 = vst [vmem:[%s1867_s24 + $0x50] sm:$0xff] %v1299_v22   ;;  %v795_v28 = vadd.f32 %v1392_v26, %v1853_v24  ;;  %v811_v29 = vadd.f32 %v1408_v27, %v1853_v24  ;;  %v824_v38 = vmax.f32 %v792_v23, 0.0 }
 0x135   : > { %v586_v32 = vpop.f32.mrf.mxu0  ;;  %v650_v33 = vpop.f32.mrf.mxu1  ;;  %v840_v39 = vmax.f32 %v808_v25, 0.0 }
 0x136   : > { %v827_v34 = vmax.f32 %v795_v28, 0.0  ;;  %v843_v35 = vmax.f32 %v811_v29, 0.0  ;;  %v793_v36 = vadd.f32 %v1853_v24, %v586_v32  ;;  %v809_v37 = vadd.f32 %v1853_v24, %v650_v33 }
 0x137   : > { %v1395_v40 = vpop.f32.mrf.mxu0  ;;  %v1411_v41 = vpop.f32.mrf.mxu1 }
 0x138   : > { %v1274_v42 = vpack.c.bf16 %v827_v34, %v826_v30  ;;  %v1314_v43 = vpack.c.bf16 %v843_v35, %v842_v31  ;;  %v825_v44 = vmax.f32 %v793_v36, 0.0  ;;  %v841_v45 = vmax.f32 %v809_v37, 0.0 }
 0x139   : > { %v798_v46 = vadd.f32 %v1395_v40, %v1853_v24  ;;  %v814_v47 = vadd.f32 %v1411_v41, %v1853_v24  ;;  %v599_v48 = vpop.f32.mrf.mxu0  ;;  %v663_v49 = vpop.f32.mrf.mxu1 }
 0x13a   : > { %1330 = vst [vmem:[%s1867_s24 + $0x28] sm:$0xff] %v1274_v42   ;;  %1338 = vst [vmem:[%s1867_s24 + $0x68] sm:$0xff] %v1314_v43   ;;  %v1269_v50 = vpack.c.bf16 %v825_v44, %v824_v38  ;;  %v1309_v51 = vpack.c.bf16 %v841_v45, %v840_v39  ;;  %v796_v52 = vadd.f32 %v1853_v24, %v599_v48 }
 0x13b   : > { %v812_v53 = vadd.f32 %v1853_v24, %v663_v49  ;;  %v1396_v54 = vpop.f32.mrf.mxu0  ;;  %v1412_v55 = vpop.f32.mrf.mxu1  ;;  %v830_v58 = vmax.f32 %v798_v46, 0.0  ;;  %v846_v59 = vmax.f32 %v814_v47, 0.0 }
 0x13c   : > { %1329 = vst [vmem:[%s1867_s24 + $0x20] sm:$0xff] %v1269_v50   ;;  %1337 = vst [vmem:[%s1867_s24 + $0x60] sm:$0xff] %v1309_v51   ;;  %v799_v56 = vadd.f32 %v1396_v54, %v1853_v24  ;;  %v815_v57 = vadd.f32 %v1412_v55, %v1853_v24  ;;  %v828_v2 = vmax.f32 %v796_v52, 0.0 }
 0x13d   : > { %v602_v60 = vpop.f32.mrf.mxu0  ;;  %v666_v61 = vpop.f32.mrf.mxu1  ;;  %v844_v3 = vmax.f32 %v812_v53, 0.0 }
 0x13e   : > { %v831_v62 = vmax.f32 %v799_v56, 0.0  ;;  %v847_v63 = vmax.f32 %v815_v57, 0.0  ;;  %v797_v0 = vadd.f32 %v1853_v24, %v602_v60  ;;  %v813_v1 = vadd.f32 %v1853_v24, %v666_v61 }
 0x140   : > { %v1284_v4 = vpack.c.bf16 %v831_v62, %v830_v58  ;;  %v1324_v5 = vpack.c.bf16 %v847_v63, %v846_v59  ;;  %v829_v6 = vmax.f32 %v797_v0, 0.0  ;;  %v845_v7 = vmax.f32 %v813_v1, 0.0 }
 0x142   : > { %1332 = vst [vmem:[%s1867_s24 + $0x38] sm:$0xff] %v1284_v4   ;;  %1340 = vst [vmem:[%s1867_s24 + $0x78] sm:$0xff] %v1324_v5   ;;  %v1279_v24 = vpack.c.bf16 %v829_v6, %v828_v2  ;;  %v1319_v8 = vpack.c.bf16 %v845_v7, %v844_v3 }
 0x144   : > { %1331 = vst [vmem:[%s1867_s24 + $0x30] sm:$0xff] %v1279_v24   ;;  %1339 = vst [vmem:[%s1867_s24 + $0x70] sm:$0xff] %v1319_v8  }
 0x145   : > { %1597 = shalt.err (!%p1594_p5)
}
 0x146   : > { %s1598_s18 = scalar_lea.hbm %s1908_s21, 2048  ;;  %s1602_s27 = scalar_lea.hbm %s1965_s3, 4096 }
 0x147   : > { %p1599_p7 = scmp.ne.s32.totalorder %s1908_s21, %s1598_s18  ;;  %p1603_p9 = scmp.lt.s32.totalorder %s1908_s21, %s1965_s3 }
 0x148   : > { %p1604_p11 = scmp.lt.s32.totalorder %s1602_s27, %s1598_s18 }
 0x149   : > { %p1600_p4 = pnand %p1599_p7, %p1787_p13 }
 0x14a   : > { %p1605_p10 = por %p1604_p11, %p1603_p9 }
 0x14b   : > { %p1601_p6 = pneg %p1600_p4 }
 0x14d   : > { %p1606_p1 = pnand %p1605_p10, %p1601_p6 }
 0x14f   : > { %1609 = shalt.err (!%p1606_p1)
}
 0x150   : > { %s1675_s24 = smov 64   ;;  %s1676_s30 = smov 4  }
 0x151   : > { %1435 = dma.vmem_to_hbm [thread:$0]  (%p1787_p13), %s1910_s29, 2048, %s1908_s21, %s1009_s15, %s1675_s24, %s1675_s24, %s1676_s30  }
 0x152 PF: > { %s1038_s5 = sand.u32 1, %s1648_s12   ;;  %p1981_p8 = scmp.ne.s32.totalorder %s1972_s23, 0 }
 0x153   : > { %p1982_p12 = scmp.ge.s32.totalorder %s1668_s17, 2  ;;  %s1039_s6 = scalar_lea.sflag [#allocation5], %s1038_s5 }
 0x155   : > { %p1446_p0 = pnand %p1982_p12, %p1981_p8 }
 0x157   : > { %p1447_p2 = pneg %p1446_p0 }
 0x159   : > { %1643 = dma.done.wait (%p1447_p2), %s1039_s6, 2048  }
 0x15a   : > { %1645 = vsyncadd (%p1447_p2), %s1039_s6, 4294965248  ;;  %s20_s17 = sadd.s32 1, %s1668_s17   ;;  %s1983_s12 = smov %s1652_s13 }
 0x15b   : > { %p17_p3 = scmp.ge.s32.totalorder %s20_s17, 4   ;;  %s1984_s13 = smov %s1656_s14 }
 0x15c   : > { %s1985_s14 = smov %s1796_s19  ;;  %s1986_s15 = smov %s1664_s16 }
 0x15d   : > { %s1987_s16 = smov %s1989_s28  ;;  %19 = sbr.rel (!%p17_p3) target bundleno = 7 (0x7), region = 93 }
 0x162   :  { %1044 = vsyncpa [#allocation4], 1 }
 0x163   :  { %1046 = vsyncpa [#allocation4 + $0x1], 1 }
 0x164   :  { %1047 = vsyncpa [#allocation7], 1 }
 0x165   :  { %1048 = vsyncpa [#allocation5], 1 }
 0x166   :  { %1050 = vsyncpa [#allocation5 + $0x1], 1 }

</bundles_post_ra>
